<compile_context>
chip_gen: v6e
topology: v6e:2x2x1
jax: 0.10.0
libtpu: 0.0.40
codegen_flags: <defaults>
</compile_context>

<pallas_src>
import functools

import jax
import jax.numpy as jnp
from jax import lax
from jax.experimental import pallas as pl
from jax.experimental.pallas import tpu as pltpu


def _mha_kernel(xq_ref, xk_ref, xv_ref,
                wq_ref, bq_ref, wk_ref, bk_ref, wv_ref, bv_ref,
                wo_ref, bo_ref,
                out_ref, slab_ref,
                *, num_heads, dk, dv, scale, causal, tq):
    f32 = jnp.float32
    bf16 = jnp.bfloat16

    xq = xq_ref[0]            # (TQ, D) bf16
    xk = xk_ref[0]            # (S,  D) bf16
    xv = xv_ref[0]            # (S,  D) bf16
    S = xk.shape[0]

    # Fused, lane-dense projections for all heads at once (f32 accumulation).
    q_all = jnp.dot(xq, wq_ref[...], preferred_element_type=f32) + bq_ref[...]  # (TQ, H*dk)
    k_all = jnp.dot(xk, wk_ref[...], preferred_element_type=f32) + bk_ref[...]  # (S,  H*dk)
    v_all = (jnp.dot(xv, wv_ref[...], preferred_element_type=f32)
             + bv_ref[...]).astype(bf16)                                        # (S,  H*dv)

    if causal:
        q_start = pl.program_id(1) * tq
        row_ids = q_start + lax.broadcasted_iota(jnp.int32, (tq, S), 0)
        col_ids = lax.broadcasted_iota(jnp.int32, (tq, S), 1)
        allow = row_ids >= col_ids                     # (TQ, S) bool
    else:
        allow = None

    for h in range(num_heads):                         # static unroll (few heads)
        q = q_all[:, h * dk:(h + 1) * dk].astype(bf16)     # (TQ, dk)
        k = k_all[:, h * dk:(h + 1) * dk].astype(bf16)     # (S,  dk)
        v = v_all[:, h * dv:(h + 1) * dv]                  # (S,  dv) bf16

        # scores = Q K^T * scale  (contract last dims directly, no transpose)
        s = lax.dot_general(q, k, (((1,), (1,)), ((), ())),
                            preferred_element_type=f32) * scale        # (TQ, S)
        if allow is not None:
            s = jnp.where(allow, s, jnp.float32(-jnp.inf))

        # numerically stable softmax over keys (f32)
        s = s - jnp.max(s, axis=-1, keepdims=True)
        p = jnp.exp(s)
        p = p * pl.reciprocal(jnp.sum(p, axis=-1, keepdims=True), approx=True)

        o = jnp.dot(p.astype(bf16), v, preferred_element_type=f32)     # (TQ, dv)
        slab_ref[:, h * dv:(h + 1) * dv] = o            # write head slice into slab

    concat = slab_ref[...].astype(bf16)                 # (TQ, H*dv)
    out = jnp.dot(concat, wo_ref[...], preferred_element_type=f32) + bo_ref[...]
    out_ref[0] = out.astype(out_ref.dtype)


def multi_head_attention(xq, xk, xv, params, *, causal=False, tq=None):
    """Fused MHA forward. xq/xk/xv: (B, S, dmodel)."""
    B, S, D = xq.shape
    out_dtype = xq.dtype

    wq, bq = params["wq"], params["bq"]      # (H, D, dk), (H, dk)
    wk, bk = params["wk"], params["bk"]
    wv, bv = params["wv"], params["bv"]
    wo, bo = params["wo"], params["bo"]      # (H*dv, D), (1, D)
    H, _, dk = wq.shape
    dv = wv.shape[2]
    scale = 1.0 / (dk ** 0.5)

    bf16 = jnp.bfloat16

    # Pack per-head weights into lane-dense fused matrices (outside the kernel).
    def fuse_w(w):   # (H, D, d) -> (D, H*d)
        return jnp.transpose(w, (1, 0, 2)).reshape(D, -1)

    def fuse_b(b):   # (H, d) -> (1, H*d)
        return b.reshape(1, -1)

    wq_a, bq_a = fuse_w(wq).astype(bf16), fuse_b(bq)
    wk_a, bk_a = fuse_w(wk).astype(bf16), fuse_b(bk)
    wv_a, bv_a = fuse_w(wv).astype(bf16), fuse_b(bv)
    wo_b = wo.astype(bf16)
    bo_b = bo                                 # (1, D) f32

    # Cast activations to bf16 (halves activation DMA; accumulation stays f32).
    xq_b, xk_b, xv_b = (x.astype(bf16) for x in (xq, xk, xv))

    # Query-sequence tiling.
    if tq is None:
        tq = S
        for cand in (512, 256, 128):
            if S > cand and S % cand == 0:
                tq = cand
                break
    assert S % tq == 0 and (tq == S or tq % 8 == 0), "bad query tile size"
    grid = (B, S // tq)

    def const_spec(shape):
        n = len(shape)
        return pl.BlockSpec(shape, lambda b, qi, _n=n: (0,) * _n)

    kernel = functools.partial(
        _mha_kernel, num_heads=H, dk=dk, dv=dv,
        scale=scale, causal=causal, tq=tq)

    return pl.pallas_call(
        kernel,
        out_shape=jax.ShapeDtypeStruct((B, S, D), out_dtype),
        grid_spec=pltpu.PrefetchScalarGridSpec(
            num_scalar_prefetch=0,
            grid=grid,
            in_specs=[
                pl.BlockSpec((1, tq, D), lambda b, qi: (b, qi, 0)),  # XQ tile
                pl.BlockSpec((1, S, D), lambda b, qi: (b, 0, 0)),    # XK (full seq)
                pl.BlockSpec((1, S, D), lambda b, qi: (b, 0, 0)),    # XV (full seq)
                const_spec(wq_a.shape), const_spec(bq_a.shape),
                const_spec(wk_a.shape), const_spec(bk_a.shape),
                const_spec(wv_a.shape), const_spec(bv_a.shape),
                const_spec(wo_b.shape), const_spec(bo_b.shape),
            ],
            out_specs=pl.BlockSpec((1, tq, D), lambda b, qi: (b, qi, 0)),
            scratch_shapes=[pltpu.VMEM((tq, H * dv), jnp.float32)],  # head slab
        ),
        compiler_params=pltpu.CompilerParams(
            dimension_semantics=("parallel", "parallel"),
            vmem_limit_bytes=64 * 1024 * 1024),
    )(xq_b, xk_b, xv_b,
      wq_a, bq_a, wk_a, bk_a, wv_a, bv_a, wo_b, bo_b)


def init_params(key, dmodel, num_heads):
    """Deterministic synthetic parameters (same shapes as the torch module)."""
    dk = dmodel // num_heads
    dv = dk
    ks = jax.random.split(key, 8)
    return {
        # stacked per-head Linear weights stored as (H, in, out) = Linear.weight.T
        "wq": jax.random.normal(ks[0], (num_heads, dmodel, dk), jnp.float32) * 0.1,
        "bq": jax.random.normal(ks[1], (num_heads, dk), jnp.float32) * 0.1,
        "wk": jax.random.normal(ks[2], (num_heads, dmodel, dk), jnp.float32) * 0.1,
        "bk": jax.random.normal(ks[3], (num_heads, dk), jnp.float32) * 0.1,
        "wv": jax.random.normal(ks[4], (num_heads, dmodel, dv), jnp.float32) * 0.1,
        "bv": jax.random.normal(ks[5], (num_heads, dv), jnp.float32) * 0.1,
        # final projection: (H*dv, dmodel) = Linear.weight.T, bias (1, dmodel)
        "wo": jax.random.normal(ks[6], (num_heads * dv, dmodel), jnp.float32) * 0.1,
        "bo": jax.random.normal(ks[7], (1, dmodel), jnp.float32) * 0.1,
    }


def reference_mha(xq, xk, xv, params, *, causal=False):
    """Pure-JAX f32 reference mirroring the torch module."""
    H, _, dk = params["wq"].shape
    S = xq.shape[1]
    if causal:
        mask = jnp.where(jnp.triu(jnp.ones((S, S)), k=1) == 1,
                         jnp.float32(-jnp.inf), jnp.float32(0.0))
    else:
        mask = jnp.zeros((S, S), jnp.float32)
    outs = []
    for h in range(H):
        q = xq @ params["wq"][h] + params["bq"][h]
        k = xk @ params["wk"][h] + params["bk"][h]
        v = xv @ params["wv"][h] + params["bv"][h]
        s = q @ jnp.swapaxes(k, -1, -2) / (dk ** 0.5) + mask
        p = jax.nn.softmax(s, axis=-1)
        outs.append(p @ v)
    cat = jnp.concatenate(outs, axis=-1)
    return cat @ params["wo"] + params["bo"][0]


if __name__ == "__main__":
    # Small shapes consistent with the module: batch=2, seq=block_size=8,
    # dmodel=32, num_heads=4 (dk=dv=8).
    B, S, D, H = 2, 8, 32, 4
    key = jax.random.PRNGKey(0)
    kq, kk, kv, kp = jax.random.split(key, 4)
    xq = jax.random.normal(kq, (B, S, D), jnp.float32)
    xk = jax.random.normal(kk, (B, S, D), jnp.float32)
    xv = jax.random.normal(kv, (B, S, D), jnp.float32)
    params = init_params(kp, dmodel=D, num_heads=H)

    # Exercise both the mask=False and causal (mask=True) paths.
    for causal in (False, True):
        out = multi_head_attention(xq, xk, xv, params, causal=causal)
        out = jax.block_until_ready(out)
        ref = reference_mha(xq, xk, xv, params, causal=causal)
        assert out.shape == (B, S, D)
        # bf16 matmul operands (f32 accumulation) -> slightly looser tolerance.
        assert jnp.allclose(out, ref, atol=3e-2, rtol=3e-2), (
            f"mismatch (causal={causal}): max abs err = "
            f"{float(jnp.max(jnp.abs(out - ref)))}")

    print("KERNEL_OK")
</pallas_src>

<mosaic_0001>
module attributes {stable_mosaic.version = 11 : i64} {
  func.func @_mha_kernel(%arg0: i32, %arg1: i32, %arg2: memref<1x8x32xbf16, #tpu.memory_space<vmem>>, %arg3: memref<1x8x32xbf16, #tpu.memory_space<vmem>>, %arg4: memref<1x8x32xbf16, #tpu.memory_space<vmem>>, %arg5: memref<32x32xbf16, #tpu.memory_space<vmem>>, %arg6: memref<1x32xf32, #tpu.memory_space<vmem>>, %arg7: memref<32x32xbf16, #tpu.memory_space<vmem>>, %arg8: memref<1x32xf32, #tpu.memory_space<vmem>>, %arg9: memref<32x32xbf16, #tpu.memory_space<vmem>>, %arg10: memref<1x32xf32, #tpu.memory_space<vmem>>, %arg11: memref<32x32xbf16, #tpu.memory_space<vmem>>, %arg12: memref<1x32xf32, #tpu.memory_space<vmem>>, %arg13: memref<1x8x32xf32, #tpu.memory_space<vmem>>, %arg14: memref<8x32xf32, #tpu.memory_space<vmem>>) attributes {dimension_semantics = [#tpu.dimension_semantics<parallel>, #tpu.dimension_semantics<parallel>], iteration_bounds = array<i64: 2, 1>, scalar_prefetch = 0 : i64, scratch_operands = 1 : i64, tpu.core_type = #tpu.core_type<tc>, window_params = [{transform_indices = @transform_0, window_bounds = array<i64: 1, 8, 32>}, {transform_indices = @transform_1, window_bounds = array<i64: 1, 8, 32>}, {transform_indices = @transform_2, window_bounds = array<i64: 1, 8, 32>}, {pipeline_mode = #tpu.pipeline_mode<synchronous>, transform_indices = @transform_3, window_bounds = array<i64: 32, 32>}, {pipeline_mode = #tpu.pipeline_mode<synchronous>, transform_indices = @transform_4, window_bounds = array<i64: 1, 32>}, {pipeline_mode = #tpu.pipeline_mode<synchronous>, transform_indices = @transform_5, window_bounds = array<i64: 32, 32>}, {pipeline_mode = #tpu.pipeline_mode<synchronous>, transform_indices = @transform_6, window_bounds = array<i64: 1, 32>}, {pipeline_mode = #tpu.pipeline_mode<synchronous>, transform_indices = @transform_7, window_bounds = array<i64: 32, 32>}, {pipeline_mode = #tpu.pipeline_mode<synchronous>, transform_indices = @transform_8, window_bounds = array<i64: 1, 32>}, {pipeline_mode = #tpu.pipeline_mode<synchronous>, transform_indices = @transform_9, window_bounds = array<i64: 32, 32>}, {pipeline_mode = #tpu.pipeline_mode<synchronous>, transform_indices = @transform_10, window_bounds = array<i64: 1, 32>}, {transform_indices = @transform_11, window_bounds = array<i64: 1, 8, 32>}]} {
    %c0 = arith.constant 0 : index
    %c0_0 = arith.constant 0 : index
    %c0_1 = arith.constant 0 : index
    %0 = vector.load %arg2[%c0, %c0_0, %c0_1] : memref<1x8x32xbf16, #tpu.memory_space<vmem>>, vector<1x8x32xbf16>
    %1 = vector.shape_cast %0 : vector<1x8x32xbf16> to vector<8x32xbf16>
    %c0_2 = arith.constant 0 : index
    %c0_3 = arith.constant 0 : index
    %c0_4 = arith.constant 0 : index
    %2 = vector.load %arg3[%c0_2, %c0_3, %c0_4] : memref<1x8x32xbf16, #tpu.memory_space<vmem>>, vector<1x8x32xbf16>
    %3 = vector.shape_cast %2 : vector<1x8x32xbf16> to vector<8x32xbf16>
    %c0_5 = arith.constant 0 : index
    %c0_6 = arith.constant 0 : index
    %c0_7 = arith.constant 0 : index
    %4 = vector.load %arg4[%c0_5, %c0_6, %c0_7] : memref<1x8x32xbf16, #tpu.memory_space<vmem>>, vector<1x8x32xbf16>
    %5 = vector.shape_cast %4 : vector<1x8x32xbf16> to vector<8x32xbf16>
    %c0_8 = arith.constant 0 : index
    %c0_9 = arith.constant 0 : index
    %6 = vector.load %arg5[%c0_8, %c0_9] : memref<32x32xbf16, #tpu.memory_space<vmem>>, vector<32x32xbf16>
    %cst = arith.constant dense<0.000000e+00> : vector<8x32xf32>
    %7 = tpu.matmul %1, %6, %cst {dimension_numbers = #tpu.dot_dimension_numbers<[1], [0], [0], [1], [0, 0, 1, 1], [], []>} : vector<8x32xbf16>, vector<32x32xbf16>, vector<8x32xf32> -> vector<8x32xf32>
    %c0_10 = arith.constant 0 : index
    %c0_11 = arith.constant 0 : index
    %8 = vector.load %arg6[%c0_10, %c0_11] : memref<1x32xf32, #tpu.memory_space<vmem>>, vector<1x32xf32>
    %9 = vector.broadcast %8 : vector<1x32xf32> to vector<8x32xf32>
    %10 = arith.addf %7, %9 : vector<8x32xf32>
    %c0_12 = arith.constant 0 : index
    %c0_13 = arith.constant 0 : index
    %11 = vector.load %arg7[%c0_12, %c0_13] : memref<32x32xbf16, #tpu.memory_space<vmem>>, vector<32x32xbf16>
    %cst_14 = arith.constant dense<0.000000e+00> : vector<8x32xf32>
    %12 = tpu.matmul %3, %11, %cst_14 {dimension_numbers = #tpu.dot_dimension_numbers<[1], [0], [0], [1], [0, 0, 1, 1], [], []>} : vector<8x32xbf16>, vector<32x32xbf16>, vector<8x32xf32> -> vector<8x32xf32>
    %c0_15 = arith.constant 0 : index
    %c0_16 = arith.constant 0 : index
    %13 = vector.load %arg8[%c0_15, %c0_16] : memref<1x32xf32, #tpu.memory_space<vmem>>, vector<1x32xf32>
    %14 = vector.broadcast %13 : vector<1x32xf32> to vector<8x32xf32>
    %15 = arith.addf %12, %14 : vector<8x32xf32>
    %c0_17 = arith.constant 0 : index
    %c0_18 = arith.constant 0 : index
    %16 = vector.load %arg9[%c0_17, %c0_18] : memref<32x32xbf16, #tpu.memory_space<vmem>>, vector<32x32xbf16>
    %cst_19 = arith.constant dense<0.000000e+00> : vector<8x32xf32>
    %17 = tpu.matmul %5, %16, %cst_19 {dimension_numbers = #tpu.dot_dimension_numbers<[1], [0], [0], [1], [0, 0, 1, 1], [], []>} : vector<8x32xbf16>, vector<32x32xbf16>, vector<8x32xf32> -> vector<8x32xf32>
    %c0_20 = arith.constant 0 : index
    %c0_21 = arith.constant 0 : index
    %18 = vector.load %arg10[%c0_20, %c0_21] : memref<1x32xf32, #tpu.memory_space<vmem>>, vector<1x32xf32>
    %19 = vector.broadcast %18 : vector<1x32xf32> to vector<8x32xf32>
    %20 = arith.addf %17, %19 : vector<8x32xf32>
    %21 = arith.truncf %20 : vector<8x32xf32> to vector<8x32xbf16>
    %22 = vector.extract_strided_slice %10 {offsets = [0, 0], sizes = [8, 8], strides = [1, 1]} : vector<8x32xf32> to vector<8x8xf32>
    %23 = arith.truncf %22 : vector<8x8xf32> to vector<8x8xbf16>
    %24 = vector.extract_strided_slice %15 {offsets = [0, 0], sizes = [8, 8], strides = [1, 1]} : vector<8x32xf32> to vector<8x8xf32>
    %25 = arith.truncf %24 : vector<8x8xf32> to vector<8x8xbf16>
    %26 = vector.extract_strided_slice %21 {offsets = [0, 0], sizes = [8, 8], strides = [1, 1]} : vector<8x32xbf16> to vector<8x8xbf16>
    %cst_22 = arith.constant dense<0.000000e+00> : vector<8x8xf32>
    %27 = tpu.matmul %23, %25, %cst_22 {dimension_numbers = #tpu.dot_dimension_numbers<[1], [1], [0], [0], [0, 0, 1, 0], [], []>} : vector<8x8xbf16>, vector<8x8xbf16>, vector<8x8xf32> -> vector<8x8xf32>
    %cst_23 = arith.constant 0.353553385 : f32
    %28 = vector.broadcast %cst_23 : f32 to vector<8x8xf32>
    %29 = arith.mulf %27, %28 : vector<8x8xf32>
    %cst_24 = arith.constant dense<0xFF800000> : vector<8xf32>
    %30 = vector.multi_reduction <maximumf>, %29, %cst_24 [1] : vector<8x8xf32> to vector<8xf32>
    %31 = vector.shape_cast %30 : vector<8xf32> to vector<8x1xf32>
    %32 = vector.broadcast %31 : vector<8x1xf32> to vector<8x8xf32>
    %33 = arith.subf %29, %32 : vector<8x8xf32>
    %34 = math.exp %33 : vector<8x8xf32>
    %cst_25 = arith.constant dense<0.000000e+00> : vector<8xf32>
    %35 = vector.multi_reduction <add>, %34, %cst_25 [1] : vector<8x8xf32> to vector<8xf32>
    %36 = vector.shape_cast %35 : vector<8xf32> to vector<8x1xf32>
    %37 = tpu.reciprocal %36 {approx = true} : vector<8x1xf32> -> vector<8x1xf32>
    %38 = vector.broadcast %37 : vector<8x1xf32> to vector<8x8xf32>
    %39 = arith.mulf %34, %38 : vector<8x8xf32>
    %40 = arith.truncf %39 : vector<8x8xf32> to vector<8x8xbf16>
    %cst_26 = arith.constant dense<0.000000e+00> : vector<8x8xf32>
    %41 = tpu.matmul %40, %26, %cst_26 {dimension_numbers = #tpu.dot_dimension_numbers<[1], [0], [0], [1], [0, 0, 1, 1], [], []>} : vector<8x8xbf16>, vector<8x8xbf16>, vector<8x8xf32> -> vector<8x8xf32>
    %c0_27 = arith.constant 0 : index
    %c0_28 = arith.constant 0 : index
    %42 = vector.load %arg14[%c0_27, %c0_28] : memref<8x32xf32, #tpu.memory_space<vmem>>, vector<8x8xf32>
    tpu.vector_store %arg14[%c0_27, %c0_28], %41 {strides = array<i32>} : memref<8x32xf32, #tpu.memory_space<vmem>>, vector<8x8xf32>,
    %43 = vector.extract_strided_slice %10 {offsets = [0, 8], sizes = [8, 8], strides = [1, 1]} : vector<8x32xf32> to vector<8x8xf32>
    %44 = arith.truncf %43 : vector<8x8xf32> to vector<8x8xbf16>
    %45 = vector.extract_strided_slice %15 {offsets = [0, 8], sizes = [8, 8], strides = [1, 1]} : vector<8x32xf32> to vector<8x8xf32>
    %46 = arith.truncf %45 : vector<8x8xf32> to vector<8x8xbf16>
    %47 = vector.extract_strided_slice %21 {offsets = [0, 8], sizes = [8, 8], strides = [1, 1]} : vector<8x32xbf16> to vector<8x8xbf16>
    %cst_29 = arith.constant dense<0.000000e+00> : vector<8x8xf32>
    %48 = tpu.matmul %44, %46, %cst_29 {dimension_numbers = #tpu.dot_dimension_numbers<[1], [1], [0], [0], [0, 0, 1, 0], [], []>} : vector<8x8xbf16>, vector<8x8xbf16>, vector<8x8xf32> -> vector<8x8xf32>
    %cst_30 = arith.constant 0.353553385 : f32
    %49 = vector.broadcast %cst_30 : f32 to vector<8x8xf32>
    %50 = arith.mulf %48, %49 : vector<8x8xf32>
    %cst_31 = arith.constant dense<0xFF800000> : vector<8xf32>
    %51 = vector.multi_reduction <maximumf>, %50, %cst_31 [1] : vector<8x8xf32> to vector<8xf32>
    %52 = vector.shape_cast %51 : vector<8xf32> to vector<8x1xf32>
    %53 = vector.broadcast %52 : vector<8x1xf32> to vector<8x8xf32>
    %54 = arith.subf %50, %53 : vector<8x8xf32>
    %55 = math.exp %54 : vector<8x8xf32>
    %cst_32 = arith.constant dense<0.000000e+00> : vector<8xf32>
    %56 = vector.multi_reduction <add>, %55, %cst_32 [1] : vector<8x8xf32> to vector<8xf32>
    %57 = vector.shape_cast %56 : vector<8xf32> to vector<8x1xf32>
    %58 = tpu.reciprocal %57 {approx = true} : vector<8x1xf32> -> vector<8x1xf32>
    %59 = vector.broadcast %58 : vector<8x1xf32> to vector<8x8xf32>
    %60 = arith.mulf %55, %59 : vector<8x8xf32>
    %61 = arith.truncf %60 : vector<8x8xf32> to vector<8x8xbf16>
    %cst_33 = arith.constant dense<0.000000e+00> : vector<8x8xf32>
    %62 = tpu.matmul %61, %47, %cst_33 {dimension_numbers = #tpu.dot_dimension_numbers<[1], [0], [0], [1], [0, 0, 1, 1], [], []>} : vector<8x8xbf16>, vector<8x8xbf16>, vector<8x8xf32> -> vector<8x8xf32>
    %c0_34 = arith.constant 0 : index
    %c8 = arith.constant 8 : index
    %63 = vector.load %arg14[%c0_34, %c8] : memref<8x32xf32, #tpu.memory_space<vmem>>, vector<8x8xf32>
    tpu.vector_store %arg14[%c0_34, %c8], %62 {strides = array<i32>} : memref<8x32xf32, #tpu.memory_space<vmem>>, vector<8x8xf32>,
    %64 = vector.extract_strided_slice %10 {offsets = [0, 16], sizes = [8, 8], strides = [1, 1]} : vector<8x32xf32> to vector<8x8xf32>
    %65 = arith.truncf %64 : vector<8x8xf32> to vector<8x8xbf16>
    %66 = vector.extract_strided_slice %15 {offsets = [0, 16], sizes = [8, 8], strides = [1, 1]} : vector<8x32xf32> to vector<8x8xf32>
    %67 = arith.truncf %66 : vector<8x8xf32> to vector<8x8xbf16>
    %68 = vector.extract_strided_slice %21 {offsets = [0, 16], sizes = [8, 8], strides = [1, 1]} : vector<8x32xbf16> to vector<8x8xbf16>
    %cst_35 = arith.constant dense<0.000000e+00> : vector<8x8xf32>
    %69 = tpu.matmul %65, %67, %cst_35 {dimension_numbers = #tpu.dot_dimension_numbers<[1], [1], [0], [0], [0, 0, 1, 0], [], []>} : vector<8x8xbf16>, vector<8x8xbf16>, vector<8x8xf32> -> vector<8x8xf32>
    %cst_36 = arith.constant 0.353553385 : f32
    %70 = vector.broadcast %cst_36 : f32 to vector<8x8xf32>
    %71 = arith.mulf %69, %70 : vector<8x8xf32>
    %cst_37 = arith.constant dense<0xFF800000> : vector<8xf32>
    %72 = vector.multi_reduction <maximumf>, %71, %cst_37 [1] : vector<8x8xf32> to vector<8xf32>
    %73 = vector.shape_cast %72 : vector<8xf32> to vector<8x1xf32>
    %74 = vector.broadcast %73 : vector<8x1xf32> to vector<8x8xf32>
    %75 = arith.subf %71, %74 : vector<8x8xf32>
    %76 = math.exp %75 : vector<8x8xf32>
    %cst_38 = arith.constant dense<0.000000e+00> : vector<8xf32>
    %77 = vector.multi_reduction <add>, %76, %cst_38 [1] : vector<8x8xf32> to vector<8xf32>
    %78 = vector.shape_cast %77 : vector<8xf32> to vector<8x1xf32>
    %79 = tpu.reciprocal %78 {approx = true} : vector<8x1xf32> -> vector<8x1xf32>
    %80 = vector.broadcast %79 : vector<8x1xf32> to vector<8x8xf32>
    %81 = arith.mulf %76, %80 : vector<8x8xf32>
    %82 = arith.truncf %81 : vector<8x8xf32> to vector<8x8xbf16>
    %cst_39 = arith.constant dense<0.000000e+00> : vector<8x8xf32>
    %83 = tpu.matmul %82, %68, %cst_39 {dimension_numbers = #tpu.dot_dimension_numbers<[1], [0], [0], [1], [0, 0, 1, 1], [], []>} : vector<8x8xbf16>, vector<8x8xbf16>, vector<8x8xf32> -> vector<8x8xf32>
    %c0_40 = arith.constant 0 : index
    %c16 = arith.constant 16 : index
    %84 = vector.load %arg14[%c0_40, %c16] : memref<8x32xf32, #tpu.memory_space<vmem>>, vector<8x8xf32>
    tpu.vector_store %arg14[%c0_40, %c16], %83 {strides = array<i32>} : memref<8x32xf32, #tpu.memory_space<vmem>>, vector<8x8xf32>,
    %85 = vector.extract_strided_slice %10 {offsets = [0, 24], sizes = [8, 8], strides = [1, 1]} : vector<8x32xf32> to vector<8x8xf32>
    %86 = arith.truncf %85 : vector<8x8xf32> to vector<8x8xbf16>
    %87 = vector.extract_strided_slice %15 {offsets = [0, 24], sizes = [8, 8], strides = [1, 1]} : vector<8x32xf32> to vector<8x8xf32>
    %88 = arith.truncf %87 : vector<8x8xf32> to vector<8x8xbf16>
    %89 = vector.extract_strided_slice %21 {offsets = [0, 24], sizes = [8, 8], strides = [1, 1]} : vector<8x32xbf16> to vector<8x8xbf16>
    %cst_41 = arith.constant dense<0.000000e+00> : vector<8x8xf32>
    %90 = tpu.matmul %86, %88, %cst_41 {dimension_numbers = #tpu.dot_dimension_numbers<[1], [1], [0], [0], [0, 0, 1, 0], [], []>} : vector<8x8xbf16>, vector<8x8xbf16>, vector<8x8xf32> -> vector<8x8xf32>
    %cst_42 = arith.constant 0.353553385 : f32
    %91 = vector.broadcast %cst_42 : f32 to vector<8x8xf32>
    %92 = arith.mulf %90, %91 : vector<8x8xf32>
    %cst_43 = arith.constant dense<0xFF800000> : vector<8xf32>
    %93 = vector.multi_reduction <maximumf>, %92, %cst_43 [1] : vector<8x8xf32> to vector<8xf32>
    %94 = vector.shape_cast %93 : vector<8xf32> to vector<8x1xf32>
    %95 = vector.broadcast %94 : vector<8x1xf32> to vector<8x8xf32>
    %96 = arith.subf %92, %95 : vector<8x8xf32>
    %97 = math.exp %96 : vector<8x8xf32>
    %cst_44 = arith.constant dense<0.000000e+00> : vector<8xf32>
    %98 = vector.multi_reduction <add>, %97, %cst_44 [1] : vector<8x8xf32> to vector<8xf32>
    %99 = vector.shape_cast %98 : vector<8xf32> to vector<8x1xf32>
    %100 = tpu.reciprocal %99 {approx = true} : vector<8x1xf32> -> vector<8x1xf32>
    %101 = vector.broadcast %100 : vector<8x1xf32> to vector<8x8xf32>
    %102 = arith.mulf %97, %101 : vector<8x8xf32>
    %103 = arith.truncf %102 : vector<8x8xf32> to vector<8x8xbf16>
    %cst_45 = arith.constant dense<0.000000e+00> : vector<8x8xf32>
    %104 = tpu.matmul %103, %89, %cst_45 {dimension_numbers = #tpu.dot_dimension_numbers<[1], [0], [0], [1], [0, 0, 1, 1], [], []>} : vector<8x8xbf16>, vector<8x8xbf16>, vector<8x8xf32> -> vector<8x8xf32>
    %c0_46 = arith.constant 0 : index
    %c24 = arith.constant 24 : index
    %105 = vector.load %arg14[%c0_46, %c24] : memref<8x32xf32, #tpu.memory_space<vmem>>, vector<8x8xf32>
    tpu.vector_store %arg14[%c0_46, %c24], %104 {strides = array<i32>} : memref<8x32xf32, #tpu.memory_space<vmem>>, vector<8x8xf32>,
    %c0_47 = arith.constant 0 : index
    %c0_48 = arith.constant 0 : index
    %106 = vector.load %arg14[%c0_47, %c0_48] : memref<8x32xf32, #tpu.memory_space<vmem>>, vector<8x32xf32>
    %107 = arith.truncf %106 : vector<8x32xf32> to vector<8x32xbf16>
    %c0_49 = arith.constant 0 : index
    %c0_50 = arith.constant 0 : index
    %108 = vector.load %arg11[%c0_49, %c0_50] : memref<32x32xbf16, #tpu.memory_space<vmem>>, vector<32x32xbf16>
    %cst_51 = arith.constant dense<0.000000e+00> : vector<8x32xf32>
    %109 = tpu.matmul %107, %108, %cst_51 {dimension_numbers = #tpu.dot_dimension_numbers<[1], [0], [0], [1], [0, 0, 1, 1], [], []>} : vector<8x32xbf16>, vector<32x32xbf16>, vector<8x32xf32> -> vector<8x32xf32>
    %c0_52 = arith.constant 0 : index
    %c0_53 = arith.constant 0 : index
    %110 = vector.load %arg12[%c0_52, %c0_53] : memref<1x32xf32, #tpu.memory_space<vmem>>, vector<1x32xf32>
    %111 = vector.broadcast %110 : vector<1x32xf32> to vector<8x32xf32>
    %112 = arith.addf %109, %111 : vector<8x32xf32>
    %c0_54 = arith.constant 0 : index
    %c0_55 = arith.constant 0 : index
    %c0_56 = arith.constant 0 : index
    %113 = vector.load %arg13[%c0_54, %c0_55, %c0_56] : memref<1x8x32xf32, #tpu.memory_space<vmem>>, vector<1x8x32xf32>
    %114 = vector.shape_cast %113 : vector<1x8x32xf32> to vector<8x32xf32>
    %115 = vector.shape_cast %112 : vector<8x32xf32> to vector<1x8x32xf32>
    tpu.vector_store %arg13[%c0_54, %c0_55, %c0_56], %115 {strides = array<i32>} : memref<1x8x32xf32, #tpu.memory_space<vmem>>, vector<1x8x32xf32>,
    return
  }
  func.func @transform_0(%arg0: i32, %arg1: i32) -> (i32, i32, i32) {
    %c0_i32 = arith.constant 0 : i32
    %c0_i32_0 = arith.constant 0 : i32
    return %arg0, %arg1, %c0_i32 : i32, i32, i32
  }
  func.func @transform_1(%arg0: i32, %arg1: i32) -> (i32, i32, i32) {
    %c0_i32 = arith.constant 0 : i32
    %c0_i32_0 = arith.constant 0 : i32
    %c0_i32_1 = arith.constant 0 : i32
    return %arg0, %c0_i32, %c0_i32_0 : i32, i32, i32
  }
  func.func @transform_2(%arg0: i32, %arg1: i32) -> (i32, i32, i32) {
    %c0_i32 = arith.constant 0 : i32
    %c0_i32_0 = arith.constant 0 : i32
    %c0_i32_1 = arith.constant 0 : i32
    return %arg0, %c0_i32, %c0_i32_0 : i32, i32, i32
  }
  func.func @transform_3(%arg0: i32, %arg1: i32) -> (i32, i32) {
    %c0_i32 = arith.constant 0 : i32
    %c0_i32_0 = arith.constant 0 : i32
    %c0_i32_1 = arith.constant 0 : i32
    return %c0_i32, %c0_i32_0 : i32, i32
  }
  func.func @transform_4(%arg0: i32, %arg1: i32) -> (i32, i32) {
    %c0_i32 = arith.constant 0 : i32
    %c0_i32_0 = arith.constant 0 : i32
    %c0_i32_1 = arith.constant 0 : i32
    return %c0_i32, %c0_i32_0 : i32, i32
  }
  func.func @transform_5(%arg0: i32, %arg1: i32) -> (i32, i32) {
    %c0_i32 = arith.constant 0 : i32
    %c0_i32_0 = arith.constant 0 : i32
    %c0_i32_1 = arith.constant 0 : i32
    return %c0_i32, %c0_i32_0 : i32, i32
  }
  func.func @transform_6(%arg0: i32, %arg1: i32) -> (i32, i32) {
    %c0_i32 = arith.constant 0 : i32
    %c0_i32_0 = arith.constant 0 : i32
    %c0_i32_1 = arith.constant 0 : i32
    return %c0_i32, %c0_i32_0 : i32, i32
  }
  func.func @transform_7(%arg0: i32, %arg1: i32) -> (i32, i32) {
    %c0_i32 = arith.constant 0 : i32
    %c0_i32_0 = arith.constant 0 : i32
    %c0_i32_1 = arith.constant 0 : i32
    return %c0_i32, %c0_i32_0 : i32, i32
  }
  func.func @transform_8(%arg0: i32, %arg1: i32) -> (i32, i32) {
    %c0_i32 = arith.constant 0 : i32
    %c0_i32_0 = arith.constant 0 : i32
    %c0_i32_1 = arith.constant 0 : i32
    return %c0_i32, %c0_i32_0 : i32, i32
  }
  func.func @transform_9(%arg0: i32, %arg1: i32) -> (i32, i32) {
    %c0_i32 = arith.constant 0 : i32
    %c0_i32_0 = arith.constant 0 : i32
    %c0_i32_1 = arith.constant 0 : i32
    return %c0_i32, %c0_i32_0 : i32, i32
  }
  func.func @transform_10(%arg0: i32, %arg1: i32) -> (i32, i32) {
    %c0_i32 = arith.constant 0 : i32
    %c0_i32_0 = arith.constant 0 : i32
    %c0_i32_1 = arith.constant 0 : i32
    return %c0_i32, %c0_i32_0 : i32, i32
  }
  func.func @transform_11(%arg0: i32, %arg1: i32) -> (i32, i32, i32) {
    %c0_i32 = arith.constant 0 : i32
    %c0_i32_0 = arith.constant 0 : i32
    return %arg0, %arg1, %c0_i32 : i32, i32, i32
  }
}

</mosaic_0001>

<bundles_post_ra>
// kernel: tpu_custom_call.1
= control target key start
LH: loop header
LB: loop body
LE: loop exit
PB: predicated region body
PF: predicated region fallthrough
CT: control target
= control target key end

     0   :  { %s2619_s0 = inlined_call_operand.hbm [shape: bf16[2,8,32], index: 0, kind: input, shape index: {}]   ;;  %s2620_s1 = inlined_call_operand.hbm [shape: bf16[2,8,32], index: 1, kind: input, shape index: {}]   ;;  %s2621_s2 = inlined_call_operand.hbm [shape: bf16[2,8,32], index: 2, kind: input, shape index: {}]   ;;  %s2622_s3 = inlined_call_operand.hbm [shape: bf16[32,32], index: 3, kind: input, shape index: {}]   ;;  %s2623_s4 = inlined_call_operand.hbm [shape: f32[1,32], index: 4, kind: input, shape index: {}]   ;;  %s2624_s5 = inlined_call_operand.hbm [shape: bf16[32,32], index: 5, kind: input, shape index: {}]   ;;  %s2625_s6 = inlined_call_operand.hbm [shape: f32[1,32], index: 6, kind: input, shape index: {}]   ;;  %s2626_s7 = inlined_call_operand.hbm [shape: bf16[32,32], index: 7, kind: input, shape index: {}]   ;;  %s2627_s8 = inlined_call_operand.hbm [shape: f32[1,32], index: 8, kind: input, shape index: {}]   ;;  %s2628_s9 = inlined_call_operand.vmem [shape: bf16[32,32], index: 9, kind: input, shape index: {}]   ;;  %s2629_s10 = inlined_call_operand.vmem [shape: f32[1,32], index: 10, kind: input, shape index: {}]   ;;  %s2630_s11 = inlined_call_operand.hbm [shape: f32[2,8,32], index: 11, kind: output, shape index: {}]  }
   0x1   :  { %2646 = sst [smem:[#allocation31_spill]] %s2622_s3 }
   0x2   :  { %2647 = sst [smem:[#allocation32_spill]] %s2624_s5 }
   0x3   :  { %2648 = sst [smem:[#allocation33_spill]] %s2626_s7 }
   0x4   :  { %2649 = sst [smem:[#allocation34_spill]] %s2629_s10 }
   0x5   :  { %2650 = sst [smem:[#allocation35_spill]] %s2630_s11 }
   0x6   :  { %16 = vsyncpa [#allocation4], 0 }
   0x7   :  { %18 = vsyncpa [#allocation4 + $0x1], 0 }
   0x8   :  { %19 = vsyncpa [#allocation7], 0 }
   0x9   :  { %21 = vsyncpa [#allocation7 + $0x1], 0 }
   0xa   :  { %22 = vsyncpa [#allocation10], 0 }
   0xb   :  { %23 = vsyncpa [#allocation13], 0 }
   0xc   :  { %24 = vsyncpa [#allocation16], 0 }
   0xd   :  { %25 = vsyncpa [#allocation5], 0 }
   0xe   :  { %27 = vsyncpa [#allocation5 + $0x1], 0  ;;  %s2251_s17 = smov 0   ;;  %s2253_s18 = smov 0  }
   0xf   :  { %s2255_s19 = smov 0   ;;  %s2257_s20 = smov 0  }
  0x10   :  { %s2259_s21 = smov 0   ;;  %s2261_s22 = smov 0  }
  0x11 LB: > { %2651 = sst [smem:[#allocation25_spill]] %s2149_s17  ;;  %s2282_s23 = sadd.s32 4294967295, %s2169_s22   ;;  %s2169_s22 = sphi %s2261_s22, %s33_s22   ;;  %s2165_s21 = sphi %s2259_s21, %s2691_s21   ;;  %s2161_s20 = sphi %s2257_s20, %s2690_s20   ;;  %s2157_s19 = sphi %s2255_s19, %s2694_s19   ;;  %s2153_s18 = sphi %s2253_s18, %s2693_s18   ;;  %s2149_s17 = sphi %s2251_s17, %s2692_s17  }
  0x12   : > { %2652 = sst [smem:[#allocation26_spill]] %s2165_s21  ;;  %p1505_p0 = scmp.ge.s32.totalorder %s2169_s22, 1 }
  0x13   : > { %2653 = sst [smem:[#allocation27_spill]] %s2169_s22  ;;  %p2631_p1 = scmp.eq.s32.totalorder %s2282_s23, 0 }
  0x14   : > { %p326_p2 = scmp.lt.s32.totalorder %s2169_s22, 3  ;;  %s2171_s25 = smov [#allocation9]  }
  0x15   : > { %s338_s26 = sshll.u32 %s2171_s25, 4  ;;  %s2172_s28 = smov [#allocation12]   ;;  %s339_s26 = int_to_ptr.vmem [resolvable:$true] %s338_s26 }
  0x16   : > { %p2287_p3 = pnand %p1505_p0, %p326_p2  ;;  %s362_s29 = sshll.u32 %s2172_s28, 4  ;;  %s363_s29 = int_to_ptr.vmem [resolvable:$true] %s362_s29 }
  0x17   : > { %s2173_s30 = smov [#allocation15]   ;;  %s1844_s14 = scalar_lea.vmem %s339_s26, 256 }
  0x18   : > { %s2654_s24 = scalar_select %p2287_p3, 1, 0 }
  0x19   : > { %p1698_p4 = pneg %p2287_p3  ;;  %s386_s12 = sshll.u32 %s2173_s30, 4  ;;  %s387_s12 = int_to_ptr.vmem [resolvable:$true] %s386_s12 }
  0x1a   : > { %p1845_p8 = scmp.ne.s32.totalorder %s339_s26, %s1844_s14  ;;  %p1852_p11 = scmp.lt.s32.totalorder %s339_s26, %s339_s26 }
  0x1b   : > { %p2296_p6 = pnand %p1698_p4, %p2631_p1  ;;  %p1853_p12 = scmp.lt.s32.totalorder %s1844_s14, %s1844_s14 }
  0x1d   : > { %s2655_s27 = scalar_select %p2296_p6, 1, 0 }
  0x1e   : > { %p2302_p7 = pneg %p2296_p6  ;;  %p1854_p13 = por %p1853_p12, %p1852_p11 }
  0x20   : > { %p1847_p9 = pnand %p1845_p8, %p2302_p7 }
  0x22   : > { %p1848_p10 = pneg %p1847_p9 }
  0x24   : > { %p1855_p0 = pnand %p1854_p13, %p1848_p10 }
  0x26   : > { %1858 = shalt.err (!%p1855_p0)
}
  0x27   : > { %s2174_s15 = smov 64   ;;  %s2175_s16 = smov 4  }
  0x28   : > { %s2657_s3 = sld [smem:[#allocation31_spill]]  ;;  %s1870_s30 = scalar_lea.vmem %s363_s29, 256 }
  0x29   : > { %p1871_p2 = scmp.ne.s32.totalorder %s363_s29, %s1870_s30  ;;  %p1878_p9 = scmp.lt.s32.totalorder %s363_s29, %s363_s29 }
  0x2a   : > { %p1879_p5 = scmp.lt.s32.totalorder %s1870_s30, %s1870_s30 }
  0x2b   : > { %p1873_p4 = pnand %p1871_p2, %p2302_p7 }
  0x2c   : > { %p1880_p1 = por %p1879_p5, %p1878_p9 }
  0x2d   : > { %p1874_p8 = pneg %p1873_p4 }
  0x2e   : > { %1701 = dma.hbm_to_vmem [thread:$0]  (!%p2296_p6), %s2657_s3, 256, %s339_s26, [#allocation10], %s2174_s15, %s2174_s15, %s2175_s16  }
  0x2f   : > { %p1881_p11 = pnand %p1880_p1, %p1874_p8 }
  0x31   : > { %1884 = shalt.err (!%p1881_p11)
}
  0x32   : > { %s2658_s5 = sld [smem:[#allocation32_spill]]  ;;  %s1896_s25 = scalar_lea.vmem %s387_s12, 256 }
  0x33   : > { %p1897_p10 = scmp.ne.s32.totalorder %s387_s12, %s1896_s25  ;;  %p1904_p0 = scmp.lt.s32.totalorder %s387_s12, %s387_s12 }
  0x34   : > { %p1905_p2 = scmp.lt.s32.totalorder %s1896_s25, %s1896_s25 }
  0x35   : > { %p1899_p12 = pnand %p1897_p10, %p2302_p7 }
  0x36   : > { %p1906_p4 = por %p1905_p2, %p1904_p0 }
  0x37   : > { %p1900_p13 = pneg %p1899_p12 }
  0x38   : > { %1707 = dma.hbm_to_vmem [thread:$0]  (!%p2296_p6), %s2658_s5, 256, %s363_s29, [#allocation13], %s2174_s15, %s2174_s15, %s2175_s16  }
  0x39   : > { %p1907_p3 = pnand %p1906_p4, %p1900_p13 }
  0x3b   : > { %1910 = shalt.err (!%p1907_p3)
}
  0x3c   : > { %s2659_s7 = sld [smem:[#allocation33_spill]]  ;;  %s1504_s11 = sadd.s32 4294967294, %s2169_s22  }
  0x3d   : > { %s45_s29 = sadd.s32 1, %s2165_s21  ;;  %s54_s30 = sadd.s32 1, %s2157_s19 }
  0x3e   : > { %p47_p1 = scmp.ge.s32.totalorder %s45_s29, 2  ;;  %p61_p3 = scmp.ne.s32.totalorder %s2157_s19, %s2153_s18 }
  0x3f   : > { %p62_p5 = scmp.eq.s32.totalorder %s2169_s22, 0  ;;  %p67_p8 = scmp.ne.s32.totalorder %s2153_s18, %s2149_s17 }
  0x40   : > { %s2696_s29 = smov (%p47_p1, %s45_s29), 0  ;;  %p2662_p11 = scmp.eq.s32.totalorder %s2282_s23, 0 }
  0x41   : > { %2660 = sst [smem:[#allocation28_spill]] %s2696_s29  ;;  %p2337_p9 = por %p62_p5, %p61_p3 }
  0x42   : > { %1713 = dma.hbm_to_vmem [thread:$0]  (!%p2296_p6), %s2659_s7, 256, %s387_s12, [#allocation16], %s2174_s15, %s2174_s15, %s2175_s16  }
  0x43   : > { %p2343_p10 = por %p2662_p11, %p67_p8  ;;  %s49_s15 = ssub.s32 %s2165_s21, %s2696_s29 }
  0x44   : > { %p313_p12 = scmp.eq.s32.totalorder %s2282_s23, 1  ;;  %p52_p13 = scmp.eq.s32.totalorder %s49_s15, 0 }
  0x45   : > { %s2663_s12 = scalar_select %p2343_p10, 1, 0 }
  0x46   : > { %p319_p0 = scmp.eq.s32.totalorder %s1504_s11, 1  ;;  %p2350_p2 = por %p313_p12, %p61_p3 }
  0x47   : > { %p1737_p4 = scmp.lt.s32.totalorder %s2169_s22, 2  ;;  %s2636_s28 = sand.u32 1, %s2157_s19  }
  0x48   : > { %s2664_s16 = scalar_select %p2350_p2, 1, 0 }
  0x49   : > { %s2356_s25 = scalar_select %p52_p13, %s2157_s19, %s54_s30  }
  0x4a   : > { %p2358_p1 = por %p319_p0, %p67_p8  ;;  %s2365_s3 = sshll.u32 %s2636_s28, 2 }
  0x4b   : > { %2665 = sst [smem:[#allocation29_spill]] %s2356_s25  ;;  %s2368_s5 = sshll.u32 %s2165_s21, 6 }
  0x4c   : > { %s2666_s26 = scalar_select %p2358_p1, 1, 0 }
  0x4d   : > { %p2372_p3 = pnand %p1737_p4, %p2337_p9  ;;  %s436_s30 = sand.u32 1, %s2169_s22  }
  0x4e   : > { %2667 = sst [smem:[#allocation30_spill]] %s2666_s26  ;;  %s445_s29 = scalar_lea.hbm %s2620_s1, %s2368_s5 }
  0x4f   : > { %s440_s25 = scalar_lea.vmem [#allocation6], %s2365_s3  ;;  %s2176_s28 = smov [#allocation11]  }
  0x50   : > { %s447_s26 = sshll.u32 %s440_s25, 4  ;;  %s352_s17 = sshll.u32 %s2176_s28, 4  ;;  %s448_s26 = int_to_ptr.vmem [resolvable:$true] %s447_s26  ;;  %s353_s17 = int_to_ptr.vmem [resolvable:$true] %s352_s17 }
  0x51   : > { %s2382_s21 = scalar_lea.sflag [#allocation7], %s436_s30  ;;  %p2641_p5 = pneg %p2372_p3 }
  0x52   : > { %s1924_s14 = scalar_lea.vmem %s448_s26, 64  ;;  %s2177_s22 = smov [#allocation6]  }
  0x53   : > { %p1925_p8 = scmp.ne.s32.totalorder %s448_s26, %s1924_s14  ;;  %s1929_s10 = sshll.u32 %s2177_s22, 4  ;;  %s1930_s10 = int_to_ptr.vmem [resolvable:$false] %s1929_s10 }
  0x54   : > { %s1931_s7 = scalar_lea.vmem %s1930_s10, 128  ;;  %p1932_p12 = scmp.lt.s32.totalorder %s448_s26, %s1930_s10 }
  0x55   : > { %p1927_p9 = pnand %p1925_p8, %p2641_p5  ;;  %p1933_p13 = scmp.lt.s32.totalorder %s1931_s7, %s1924_s14 }
  0x57   : > { %p1928_p11 = pneg %p1927_p9  ;;  %p1934_p0 = por %p1933_p13, %p1932_p12 }
  0x59   : > { %p1935_p4 = pnand %p1934_p0, %p1928_p11 }
  0x5b   : > { %1938 = shalt.err (!%p1935_p4)
}
  0x5c   : > { %1723 = dma.hbm_to_vmem [thread:$0]  (!%p2372_p3), %s445_s29, 64, %s448_s26, %s2382_s21  }
  0x5d   : > { %s1950_s25 = scalar_lea.vmem %s353_s17, 16  ;;  %s1957_s28 = scalar_lea.vmem %s353_s17, 32 }
  0x5e   : > { %p1951_p1 = scmp.ne.s32.totalorder %s353_s17, %s1950_s25  ;;  %p1958_p5 = scmp.lt.s32.totalorder %s353_s17, %s353_s17 }
  0x5f   : > { %p1959_p2 = scmp.lt.s32.totalorder %s1957_s28, %s1950_s25 }
  0x60   : > { %p1953_p8 = pnand %p1951_p1, %p2302_p7 }
  0x61   : > { %p1960_p10 = por %p1959_p2, %p1958_p5 }
  0x62   : > { %p1954_p9 = pneg %p1953_p8 }
  0x64   : > { %p1961_p6 = pnand %p1960_p10, %p1954_p9 }
  0x66   : > { %1964 = shalt.err (!%p1961_p6)
}
  0x67   : > { %p2669_p11 = scmp.ne.s32.totalorder %s2655_s27, 0  ;;  %s2178_s29 = smov [#allocation14]  }
  0x68   : > { %s376_s26 = sshll.u32 %s2178_s29, 4  ;;  %s2179_s30 = smov [#allocation17]   ;;  %s377_s26 = int_to_ptr.vmem [resolvable:$true] %s376_s26 }
  0x69   : > { %1704 = dma.hbm_to_vmem [thread:$0]  (!%p2669_p11), %s2623_s4, 16, %s353_s17, [#allocation10]  }
  0x6a   : > { %s400_s15 = sshll.u32 %s2179_s30, 4  ;;  %s1976_s14 = scalar_lea.vmem %s377_s26, 16  ;;  %s401_s15 = int_to_ptr.vmem [resolvable:$true] %s400_s15 }
  0x6b   : > { %p1977_p1 = scmp.ne.s32.totalorder %s377_s26, %s1976_s14  ;;  %s1983_s7 = scalar_lea.vmem %s377_s26, 32 }
  0x6c   : > { %p1984_p10 = scmp.lt.s32.totalorder %s377_s26, %s377_s26  ;;  %p1985_p6 = scmp.lt.s32.totalorder %s1983_s7, %s1976_s14 }
  0x6d   : > { %p1979_p12 = pnand %p1977_p1, %p2302_p7 }
  0x6e   : > { %p1986_p2 = por %p1985_p6, %p1984_p10 }
  0x6f   : > { %p1980_p13 = pneg %p1979_p12 }
  0x71   : > { %p1987_p5 = pnand %p1986_p2, %p1980_p13 }
  0x73   : > { %1990 = shalt.err (!%p1987_p5)
}
  0x74   : > { %1710 = dma.hbm_to_vmem [thread:$0]  (!%p2669_p11), %s2625_s6, 16, %s377_s26, [#allocation13]  }
  0x75   : > { %s2002_s28 = scalar_lea.vmem %s401_s15, 16  ;;  %s2009_s10 = scalar_lea.vmem %s401_s15, 32 }
  0x76   : > { %p2003_p0 = scmp.ne.s32.totalorder %s401_s15, %s2002_s28  ;;  %p2010_p9 = scmp.lt.s32.totalorder %s401_s15, %s401_s15 }
  0x77   : > { %p2011_p1 = scmp.lt.s32.totalorder %s2009_s10, %s2002_s28 }
  0x78   : > { %p2005_p4 = pnand %p2003_p0, %p2302_p7 }
  0x79   : > { %p2012_p12 = por %p2011_p1, %p2010_p9 }
  0x7a   : > { %p2006_p8 = pneg %p2005_p4 }
  0x7c   : > { %p2013_p10 = pnand %p2012_p12, %p2006_p8 }
  0x7e   : > { %2016 = shalt.err (!%p2013_p10)
}
  0x7f   : > { %1716 = dma.hbm_to_vmem [thread:$0]  (!%p2669_p11), %s2627_s8, 16, %s401_s15, [#allocation16]  }
  0x80   : > { %s427_s30 = scalar_lea.hbm %s2619_s0, %s2368_s5  ;;  %s421_s14 = scalar_lea.vmem [#allocation3], %s2365_s3 }
  0x81   : > { %s429_s7 = sshll.u32 %s421_s14, 4  ;;  %s463_s27 = scalar_lea.hbm %s2621_s2, %s2368_s5  ;;  %s430_s7 = int_to_ptr.vmem [resolvable:$true] %s429_s7 }
  0x82   : > { %s2670_s28 = sand.u32 1, %s2157_s19   ;;  %s2030_s22 = scalar_lea.vmem %s430_s7, 64 }
  0x83   : > { %s418_s10 = scalar_lea.sflag [#allocation4], %s2670_s28  ;;  %p2031_p7 = scmp.ne.s32.totalorder %s430_s7, %s2030_s22 }
  0x84   : > { %p2671_p13 = pneg %p2372_p3  ;;  %s2180_s15 = smov [#allocation3]  }
  0x85   : > { %s2035_s29 = sshll.u32 %s2180_s15, 4  ;;  %s2036_s29 = int_to_ptr.vmem [resolvable:$false] %s2035_s29 }
  0x86   : > { %p2033_p6 = pnand %p2031_p7, %p2671_p13  ;;  %s2037_s13 = scalar_lea.vmem %s2036_s29, 128 }
  0x87   : > { %p2038_p11 = scmp.lt.s32.totalorder %s430_s7, %s2036_s29  ;;  %p2039_p5 = scmp.lt.s32.totalorder %s2037_s13, %s2030_s22 }
  0x88   : > { %p2034_p2 = pneg %p2033_p6 }
  0x89   : > { %p2040_p0 = por %p2039_p5, %p2038_p11 }
  0x8b   : > { %p2041_p4 = pnand %p2040_p0, %p2034_p2 }
  0x8d   : > { %2044 = shalt.err (!%p2041_p4)
}
  0x8e   : > { %1720 = dma.hbm_to_vmem [thread:$0]  (!%p2372_p3), %s427_s30, 64, %s430_s7, %s418_s10  }
  0x8f   : > { %s458_s26 = scalar_lea.vmem [#allocation8], %s2365_s3  ;;  %p2672_p9 = pmov %p2671_p13 }
  0x90   : > { %s465_s14 = sshll.u32 %s458_s26, 4  ;;  %s2181_s17 = smov [#allocation8]   ;;  %s466_s14 = int_to_ptr.vmem [resolvable:$true] %s465_s14 }
  0x91   : > { %s2058_s25 = scalar_lea.vmem %s466_s14, 64  ;;  %s2063_s28 = sshll.u32 %s2181_s17, 4  ;;  %s2064_s28 = int_to_ptr.vmem [resolvable:$false] %s2063_s28 }
  0x92   : > { %p2059_p8 = scmp.ne.s32.totalorder %s466_s14, %s2058_s25  ;;  %s2065_s22 = scalar_lea.vmem %s2064_s28, 128 }
  0x93   : > { %p2066_p10 = scmp.lt.s32.totalorder %s466_s14, %s2064_s28  ;;  %p2067_p7 = scmp.lt.s32.totalorder %s2065_s22, %s2058_s25 }
  0x94   : > { %p2061_p1 = pnand %p2059_p8, %p2672_p9 }
  0x95   : > { %p2068_p13 = por %p2067_p7, %p2066_p10 }
  0x96   : > { %p2062_p12 = pneg %p2061_p1 }
  0x98   : > { %p2069_p6 = pnand %p2068_p13, %p2062_p12 }
  0x9a   : > { %2072 = shalt.err (!%p2069_p6)
}
  0x9b   : > { %1726 = dma.hbm_to_vmem [thread:$0]  (!%p2372_p3), %s463_s27, 64, %s466_s14, %s2382_s21  }
  0x9c   : > { %p2673_p2 = scmp.ne.s32.totalorder %s2654_s24, 0 }
  0x9d   : > { %s2444_s7 = sand.u32 (!%p2673_p2), 1, %s2153_s18   ;;  %p2674_p11 = scmp.ne.s32.totalorder (!%p2673_p2), %s2663_s12, 0 }
  0x9e   : > { %474 = sbr.rel (%p2673_p2) target bundleno = 1558 (0x616), region = 64  ;;  %s2447_s10 = sshll.u32 (!%p2673_p2), %s2444_s7, 2 }
  0x9f   : > { %s477_s11 = scalar_lea.sflag (!%p2673_p2), [#allocation4], %s2444_s7  ;;  %s480_s15 = scalar_lea.vmem (!%p2673_p2), [#allocation3], %s2447_s10 }
  0xa3   : > { %2124 = dma.done.wait (%p2674_p11), %s477_s11, 64  }
  0xa4   : > { %2126 = vsyncadd (%p2674_p11), %s477_s11, 4294967232  ;;  %s485_s5 = sand.u32 1, %s2282_s23   ;;  %s489_s24 = scalar_lea.vmem [#allocation6], %s2447_s10 }
  0xa5   : > { %s486_s21 = scalar_lea.sflag [#allocation7], %s485_s5 }
  0xa6   : > { %2128 = dma.done.wait (%p2674_p11), %s486_s21, 128  }
  0xa7   : > { %2130 = vsyncadd (%p2674_p11), %s486_s21, 4294967168  ;;  %s498_s27 = scalar_lea.vmem [#allocation8], %s2447_s10  ;;  %p2675_p3 = scmp.eq.s32.totalorder %s2282_s23, 0 }
  0xa9   : > { %2132 = dma.done.wait (%p2675_p3), [#allocation10], 272   ;;  %p2676_p5 = pmov %p2675_p3 }
  0xaa   : > { %p2677_p0 = pmov %p2675_p3 }
  0xab   : > { %2134 = vsyncadd (%p2676_p5), [#allocation10], 4294967024 }
  0xac   : > { %2136 = dma.done.wait (%p2677_p0), [#allocation13], 272   ;;  %p2678_p4 = pmov %p2677_p0 }
  0xad   : > { %p2679_p8 = pmov %p2677_p0 }
  0xae   : > { %2138 = vsyncadd (%p2678_p4), [#allocation13], 4294967024 }
  0xaf   : > { %2140 = dma.done.wait (%p2679_p8), [#allocation16], 272   ;;  %p2680_p9 = pmov %p2677_p0 }
  0xb0   : > { %v2182_v0 = vmov 0.0   ;;  %vm2183_vm0 = vmmov 0   ;;  %v1809_v1 = vld [vmem:[#allocation12 + $0x8] sm:$0xff]   ;;  %v1810_v2 = vld [vmem:[#allocation9 + $0x8] sm:$0xff]   ;;  %v1811_v3 = vld [vmem:[#allocation12] sm:$0xff]   ;;  %vm598_vm1 = vcmask 261120  }
  0xb1   : > { %2142 = vsyncadd (%p2680_p9), [#allocation16], 4294967024  ;;  %1594 = vmatprep.subr.bf16.mxu1 %v2182_v0  ;;  %1586 = vmatprep.subr.bf16.mxu0 %v2182_v0  ;;  %v1812_v4 = vld [vmem:[#allocation9] sm:$0xff]   ;;  %v573_v5 = vld [vmem:[%s489_s24] sm:$0xf]  ;;  %vm777_vm2 = vcmask 64512  }
  0xb2   : > { %1598 = vmatprep.mubr.msk.bf16.mxu1 %vm2183_vm0, %v2182_v0  ;;  %1590 = vmatprep.mubr.msk.bf16.mxu0 %vm2183_vm0, %v2182_v0  ;;  %v572_v6 = vld [vmem:[%s480_s15] sm:$0xf]  ;;  %v1534_v7 = vld [vmem:[#allocation14] ss:$0 sm:$0xff]  ;;  %v1530_v8 = vld [vmem:[#allocation11] ss:$0 sm:$0xff] }
  0xb3   : > { %1595 = vmatpush3.bf16.msra.mxu1 %v1809_v1  ;;  %1587 = vmatpush3.bf16.msra.mxu0 %v1810_v2  ;;  %s2184_s23 = smov 112   ;;  %s2185_s12 = smov 120   ;;  %v1813_v22 = vld [vmem:[#allocation15 + $0x8] sm:$0xff]   ;;  %v1814_v23 = vld [vmem:[#allocation15] sm:$0xff]   ;;  %v574_v24 = vld [vmem:[%s498_s27] sm:$0xf] }
  0xb4   : > { %1596 = vmatprep.subr.bf16.mxu1 %v2182_v0  ;;  %1588 = vmatprep.subr.bf16.mxu0 %v2182_v0  ;;  %s2186_s29 = smov 104   ;;  %v1538_v40 = vld [vmem:[#allocation17] ss:$0 sm:$0xff]  ;;  %vm840_vm3 = vcmask 1043456   ;;  %s2187_s13 = smov 8   ;;  %vm1003_vm4 = vcmask 130112  }
  0xb5   : > { %s2188_s28 = smov 16   ;;  %s2189_s22 = smov 24   ;;  %vm1120_vm5 = vcmask 195712   ;;  %vm1237_vm6 = vcmask 261312  }
  0xb6   : > { %s1529_s3 = sshll.u32 %s2444_s7, 3  ;;  %s2681_s11 = sld [smem:[#allocation34_spill]] }
  0xb7   : > { %1597 = vmatpush3.bf16.msra.mxu1 %v1811_v3  ;;  %1589 = vmatpush3.bf16.msra.mxu0 %v1812_v4  ;;  %s1555_s15 = sshll.u32 %s2161_s20, 7  ;;  %s570_s5 = scalar_lea.vmem [#allocation18], %s1529_s3 }
  0xb8   : > { %1610 = vmatprep.subr.bf16.mxu1 %v2182_v0  ;;  %1602 = vmatprep.subr.bf16.mxu0 %v2182_v0  ;;  %s1323_s21 = sshll.u32 %s570_s5, 4  ;;  %p2683_p12 = scmp.ne.s32.totalorder %s2664_s16, 0  ;;  %s2572_s21 = int_to_ptr.vmem [resolvable:$true] %s1323_s21 }
  0xb9   : > { %s2073_s20 = scalar_lea.vmem %s2572_s21, 128 }
  0xba   : > { %1599 = vmatmul.mubr.msk.bf16.vlgmr.msra.gmra.mxu1 %vm598_vm1, %v573_v5  ;;  %1591 = vmatmul.mubr.msk.bf16.vlgmr.msra.gmra.mxu0 %vm598_vm1, %v572_v6  ;;  %p2074_p1 = scmp.ne.s32.totalorder %s2572_s21, %s2073_s20 }
  0xbb   : > { %1612 = vmatprep.mubr.msk.bf16.mxu1 %vm2183_vm0, %v2182_v0  ;;  %1606 = vmatprep.mubr.msk.bf16.mxu0 %vm2183_vm0, %v2182_v0 }
  0xbc   : > { %1603 = vmatpush3.bf16.msra.mxu0 %v1813_v22  ;;  %p2075_p10 = pnand %p2074_p1, %p2683_p12 }
  0xbd   : > { %1604 = vmatprep.subr.bf16.mxu0 %v2182_v0 }
  0xbe   : > { %p2076_p7 = pneg %p2075_p10 }
  0xc0   : > { %1605 = vmatpush3.bf16.msra.mxu0 %v1814_v23 }
  0xc1   : > { %1616 = vmatprep.subr.bf16.mxu0 %v2182_v0 }
  0xc3   : > { %1607 = vmatmul.mubr.msk.bf16.vlgmr.msra.gmra.mxu0 %vm598_vm1, %v574_v24 }
  0xc4   : > { %1618 = vmatprep.mubr.msk.bf16.mxu0 %vm2183_vm0, %v2182_v0 }
 0x17a   : > { %v702_v9 = vpop.f32.mrf.mxu1  ;;  %v636_v11 = vpop.f32.mrf.mxu0 }
 0x17b   : > { %v703_v10 = vadd.f32 %v1534_v7, %v702_v9  ;;  %v637_v12 = vadd.f32 %v1530_v8, %v636_v11 }
 0x17c   : > { %v1600_v13 = vpop.f32.mrf.mxu1  ;;  %v1592_v15 = vpop.f32.mrf.mxu0 }
 0x17d   : > { %v776_v14 = vpack.c.bf16 %v703_v10, %v703_v10  ;;  %v775_v17 = vpack.c.bf16 %v637_v12, %v637_v12 }
 0x17e   : > { %v705_v16 = vpop.f32.mrf.mxu1  ;;  %v639_v18 = vpop.f32.mrf.mxu0 }
 0x17f   : > { %1007 = vrot.lane.b32.xlu1 %v776_v14, %s2184_s23  ;;  %889 = vrot.lane.b32.xlu0 %v776_v14, %s2185_s12  ;;  %v782_v19 = vsel %vm777_vm2, %v776_v14, 0 }
 0x180   : > { %v1601_v20 = vpop.f32.mrf.mxu1  ;;  %1611 = vmatpush3.bf16.xpose.msra.mxu1 %v782_v19  ;;  %v1593_v21 = vpop.f32.mrf.mxu0 }
 0x181   : > { %1622 = vmatprep.subr.bf16.mxu1 %v2182_v0 }
 0x183   : > { %1005 = vrot.lane.b32.xlu1 %v775_v17, %s2184_s23  ;;  %886 = vrot.lane.b32.xlu0 %v775_v17, %s2185_s12  ;;  %v768_v41 = vpop.f32.mrf.mxu0 }
 0x184   : > { %v769_v42 = vadd.f32 %v1538_v40, %v768_v41 }
 0x185   : > { %v1608_v43 = vpop.f32.mrf.mxu0 }
 0x186   : > { %v774_v44 = vpack.c.bf16 %v769_v42, %v769_v42 }
 0x187   : > { %1122 = vrot.lane.b32.xlu1 %v775_v17, %s2186_s29  ;;  %1124 = vrot.lane.b32.xlu0 %v776_v14, %s2186_s29  ;;  %v771_v45 = vpop.f32.mrf.mxu0 }
 0x188   : > { %1613 = vmatmul.mubr.msk.bf16.vlgmr.msra.gmra.mxu1 %vm777_vm2, %v775_v17  ;;  %v842_v46 = vsel %vm840_vm3, %v774_v44, 0 }
 0x189   : > { %1624 = vmatprep.mubr.msk.bf16.mxu1 %vm2183_vm0, %v2182_v0  ;;  %v1609_v47 = vpop.f32.mrf.mxu0  ;;  %1617 = vmatpush3.bf16.msra.mxu0 %v842_v46 }
 0x18a   : > { %1628 = vmatprep.subr.bf16.mxu0 %v2182_v0 }
 0x1f1   : > { %v890_v25 = vpop.permute.xlu0 %889  ;;  %v1008_v27 = vpop.permute.xlu1 %1007 }
 0x1f2   : > { %v895_v26 = vsel %vm777_vm2, %v890_v25, 0  ;;  %v1013_v29 = vsel %vm777_vm2, %v1008_v27, 0 }
 0x1f3   : > { %1623 = vmatpush3.bf16.xpose.msra.mxu1 %v895_v26 }
 0x1f4   : > { %1634 = vmatprep.subr.bf16.mxu1 %v2182_v0 }
 0x1f5   : > { %v887_v28 = vpop.permute.xlu0 %886  ;;  %v1006_v31 = vpop.permute.xlu1 %1005 }
 0x1f9   : > { %v1125_v30 = vpop.permute.xlu0 %1124  ;;  %v1123_v33 = vpop.permute.xlu1 %1122 }
 0x1fa   : > { %1625 = vmatmul.mubr.msk.bf16.vlgmr.msra.gmra.mxu1 %vm777_vm2, %v887_v28  ;;  %v1130_v32 = vsel %vm777_vm2, %v1125_v30, 0 }
 0x1fb   : > { %1635 = vmatpush3.bf16.xpose.msra.mxu1 %v1013_v29  ;;  %1636 = vmatprep.mubr.msk.bf16.mxu1 %vm2183_vm0, %v2182_v0 }
 0x1fc   : > { %1646 = vmatprep.subr.bf16.mxu1 %v2182_v0 }
 0x202   : > { %1637 = vmatmul.mubr.msk.bf16.vlgmr.msra.gmra.mxu1 %vm777_vm2, %v1006_v31 }
 0x203   : > { %1647 = vmatpush3.bf16.xpose.msra.mxu1 %v1130_v32  ;;  %1648 = vmatprep.mubr.msk.bf16.mxu1 %vm2183_vm0, %v2182_v0 }
 0x204   : > { %1658 = vmatprep.subr.bf16.mxu1 %v2182_v0 }
 0x20a   : > { %1649 = vmatmul.mubr.msk.bf16.vlgmr.msra.gmra.mxu1 %vm777_vm2, %v1123_v33 }
 0x20b   : > { %1662 = vmatprep.mubr.msk.bf16.mxu1 %vm2183_vm0, %v2182_v0 }
 0x248   : > { %v818_v34 = vpop.f32.mrf.mxu1 }
 0x249   : > { %v824_v35 = vmul.f32 0.35355338, %v818_v34 }
 0x24a   : > { %v1614_v36 = vpop.f32.mrf.mxu1 }
 0x24b   : > { %v825_v37 = vsel %vm777_vm2, %v824_v35, -inf }
 0x24c   : > { %826 = vmax.xlane.f32.xlu0 %v825_v37  ;;  %v821_v38 = vpop.f32.mrf.mxu1 }
 0x24e   : > { %v1615_v39 = vpop.f32.mrf.mxu1 }
 0x2ba   : > { %v931_v48 = vpop.f32.mrf.mxu1 }
 0x2bb   : > { %v937_v49 = vmul.f32 0.35355338, %v931_v48 }
 0x2bc   : > { %v1626_v50 = vpop.f32.mrf.mxu1 }
 0x2bd   : > { %v938_v51 = vsel %vm777_vm2, %v937_v49, -inf }
 0x2be   : > { %939 = vmax.xlane.f32.xlu1 %v938_v51  ;;  %v934_v52 = vpop.f32.mrf.mxu1 }
 0x2bf   : > { %v1815_v52 = vld [vmem:[%s2628_s9 + $0x8] sm:$0xff]  }
 0x2c0   : > { %v1627_v53 = vpop.f32.mrf.mxu1  ;;  %1659 = vmatpush3.bf16.msra.mxu1 %v1815_v52 }
 0x2c1   : > { %1660 = vmatprep.subr.bf16.mxu1 %v2182_v0 }
 0x2c2   : > { %v1049_v54 = vpop.f32.mrf.mxu1 }
 0x2c3   : > { %v1055_v55 = vmul.f32 0.35355338, %v1049_v54  ;;  %v1816_v54 = vld [vmem:[%s2628_s9] sm:$0xff]  }
 0x2c4   : > { %v1638_v56 = vpop.f32.mrf.mxu1  ;;  %1661 = vmatpush3.bf16.msra.mxu1 %v1816_v54 }
 0x2c5   : > { %v1056_v57 = vsel %vm777_vm2, %v1055_v55, -inf }
 0x2c6   : > { %1057 = vmax.xlane.f32.xlu0 %v1056_v57  ;;  %v1052_v58 = vpop.f32.mrf.mxu1 }
 0x2c8   : > { %v1639_v59 = vpop.f32.mrf.mxu1 }
 0x2ca   : > { %v1166_v60 = vpop.f32.mrf.mxu1 }
 0x2cb   : > { %v1172_v61 = vmul.f32 0.35355338, %v1166_v60 }
 0x2cc   : > { %v1650_v62 = vpop.f32.mrf.mxu1 }
 0x2cd   : > { %v1173_v63 = vsel %vm777_vm2, %v1172_v61, -inf }
 0x2ce   : > { %1174 = vmax.xlane.f32.xlu0 %v1173_v63  ;;  %v1169_v1 = vpop.f32.mrf.mxu1 }
 0x2d0   : > { %v1651_v2 = vpop.f32.mrf.mxu1 }
 0x2d5   : > { %v827_v3 = vpop.xlane.xlu0 %826 }
 0x2d6   : > { %v828_v4 = vsub.f32 %v824_v35, %v827_v3 }
 0x2d8   : > { %v829_v5 = vmul.f32 1.442695, %v828_v4  ;;  %v1550_v4 = vld [vmem:[%s2681_s11] ss:$0 sm:$0xff] }
 0x2da   : > { %1817 = vpow2.f32 %v829_v5 }
 0x2e7   : > { %v1818_v6 = vpop.eup %1817 }
 0x2e8   : > { %v831_v7 = vsel %vm777_vm2, %v1818_v6, 0.0 }
 0x2e9   : > { %832 = vadd.xlane.f32.xlu1 %v831_v7 }
 0x2fa   : > { %951 = vrot.lane.b32.xlu1 %v774_v44, %s2185_s12 }
 0x347   : > { %v940_v8 = vpop.xlane.xlu1 %939 }
 0x348   : > { %v941_v9 = vsub.f32 %v937_v49, %v940_v8 }
 0x34a   : > { %v942_v10 = vmul.f32 1.442695, %v941_v9 }
 0x34c   : > { %1819 = vpow2.f32 %v942_v10 }
 0x34f   : > { %v1058_v11 = vpop.xlane.xlu0 %1057 }
 0x350   : > { %v1059_v12 = vsub.f32 %v1055_v55, %v1058_v11 }
 0x352   : > { %v1060_v13 = vmul.f32 1.442695, %v1059_v12 }
 0x354   : > { %1821 = vpow2.f32 %v1060_v13 }
 0x357   : > { %v1175_v14 = vpop.xlane.xlu0 %1174 }
 0x358   : > { %v1176_v15 = vsub.f32 %v1172_v61, %v1175_v14 }
 0x359   : > { %v1820_v16 = vpop.eup %1819 }
 0x35a   : > { %v1177_v17 = vmul.f32 1.442695, %v1176_v15  ;;  %v944_v18 = vsel %vm777_vm2, %v1820_v16, 0.0 }
 0x35b   : > { %945 = vadd.xlane.f32.xlu0 %v944_v18 }
 0x35c   : > { %1823 = vpow2.f32 %v1177_v17 }
 0x361   : > { %v1822_v19 = vpop.eup %1821 }
 0x362   : > { %v1062_v20 = vsel %vm777_vm2, %v1822_v19, 0.0 }
 0x363   : > { %1063 = vadd.xlane.f32.xlu1 %v1062_v20 }
 0x369   : > { %v1824_v21 = vpop.eup %1823 }
 0x36a   : > { %v1179_v22 = vsel %vm777_vm2, %v1824_v21, 0.0 }
 0x36b   : > { %1180 = vadd.xlane.f32.xlu0 %v1179_v22 }
 0x372   : > { %v833_v23 = vpop.xlane.xlu1 %832 }
 0x373   : > { %1825 = vrcp.f32 %v833_v23 }
 0x374   : > { %1185 = vrot.lane.b32.xlu1 %v774_v44, %s2186_s29  ;;  %s1309_s29 = scalar_lea.sflag [#allocation5], %s2444_s7 }
 0x376   : > { %v952_v25 = vpop.permute.xlu1 %951 }
 0x377   : > { %v957_v28 = vsel %vm840_vm3, %v952_v25, 0 }
 0x380   : > { %v1826_v24 = vpop.eup %1825 }
 0x381   : > { %1068 = vrot.lane.b32.xlu0 %v774_v44, %s2184_s23  ;;  %v835_v26 = vmul.f32 %v1826_v24, %v1818_v6  ;;  %s2682_s23 = sld [smem:[#allocation35_spill]] }
 0x383   : > { %v836_v27 = vpack.c.bf16 %v835_v26, %v835_v26 }
 0x385   : > { %1619 = vmatmul.mubr.msk.bf16.vlgmr.msra.gmra.mxu0 %vm777_vm2, %v836_v27 }
 0x386   : > { %1629 = vmatpush3.bf16.msra.mxu0 %v957_v28  ;;  %1630 = vmatprep.mubr.msk.bf16.mxu0 %vm2183_vm0, %v2182_v0 }
 0x387   : > { %1640 = vmatprep.subr.bf16.mxu0 %v2182_v0  ;;  %s2570_s12 = scalar_lea.hbm %s2682_s23, %s1555_s15 }
 0x3e4   : > { %v946_v29 = vpop.xlane.xlu0 %945 }
 0x3e5   : > { %1827 = vrcp.f32 %v946_v29 }
 0x3ec   : > { %v1064_v30 = vpop.xlane.xlu1 %1063 }
 0x3ed   : > { %1829 = vrcp.f32 %v1064_v30 }
 0x3f0   : > { %v1186_v39 = vpop.permute.xlu1 %1185 }
 0x3f1   : > { %v1191_v41 = vsel %vm840_vm3, %v1186_v39, 0 }
 0x3f2   : > { %v1828_v31 = vpop.eup %1827 }
 0x3f3   : > { %v948_v32 = vmul.f32 %v1828_v31, %v1820_v16 }
 0x3f4   : > { %v1181_v33 = vpop.xlane.xlu0 %1180 }
 0x3f5   : > { %1831 = vrcp.f32 %v1181_v33  ;;  %v949_v34 = vpack.c.bf16 %v948_v32, %v948_v32 }
 0x3f7   : > { %1631 = vmatmul.mubr.msk.bf16.vlgmr.msra.gmra.mxu0 %vm777_vm2, %v949_v34 }
 0x3f8   : > { %v1069_v35 = vpop.permute.xlu0 %1068  ;;  %1642 = vmatprep.mubr.msk.bf16.mxu0 %vm2183_vm0, %v2182_v0 }
 0x3f9   : > { %v1074_v36 = vsel %vm840_vm3, %v1069_v35, 0 }
 0x3fa   : > { %v1830_v37 = vpop.eup %1829  ;;  %1641 = vmatpush3.bf16.msra.mxu0 %v1074_v36 }
 0x3fb   : > { %1652 = vmatprep.subr.bf16.mxu0 %v2182_v0  ;;  %v1066_v38 = vmul.f32 %v1830_v37, %v1822_v19 }
 0x3fd   : > { %v1067_v40 = vpack.c.bf16 %v1066_v38, %v1066_v38 }
 0x3ff   : > { %1643 = vmatmul.mubr.msk.bf16.vlgmr.msra.gmra.mxu0 %vm777_vm2, %v1067_v40 }
 0x400   : > { %1653 = vmatpush3.bf16.msra.mxu0 %v1191_v41  ;;  %1654 = vmatprep.mubr.msk.bf16.mxu0 %vm2183_vm0, %v2182_v0 }
 0x402   : > { %v1832_v42 = vpop.eup %1831 }
 0x403   : > { %v1183_v43 = vmul.f32 %v1832_v42, %v1824_v21 }
 0x405   : > { %v1184_v44 = vpack.c.bf16 %v1183_v43, %v1183_v43 }
 0x407   : > { %1655 = vmatmul.mubr.msk.bf16.vlgmr.msra.gmra.mxu0 %vm777_vm2, %v1184_v44 }
 0x445   : > { %v878_v45 = vpop.f32.mrf.mxu0 }
 0x446   : > { %884 = vst.msk [vmem:[#allocation2] sm:$0xff] %vm777_vm2, %v878_v45 }
 0x447   : > { %v1620_v46 = vpop.f32.mrf.mxu0 }
 0x449   : > { %v881_v47 = vpop.f32.mrf.mxu0 }
 0x44b   : > { %v1621_v48 = vpop.f32.mrf.mxu0 }
 0x4b7   : > { %v993_v49 = vpop.f32.mrf.mxu0 }
 0x4b8   : > { %1000 = vrot.lane.b32.xlu1 %v993_v49, %s2187_s13  ;;  %s2190_s13 = smov [#allocation18]  }
 0x4b9   : > { %v1632_v50 = vpop.f32.mrf.mxu0  ;;  %s2077_s26 = sshll.u32 %s2190_s13, 4  ;;  %s2078_s26 = int_to_ptr.vmem [resolvable:$false] %s2077_s26 }
 0x4ba   : > { %s2079_s14 = scalar_lea.vmem %s2078_s26, 256  ;;  %p2080_p13 = scmp.lt.s32.totalorder %s2572_s21, %s2078_s26 }
 0x4bb   : > { %v996_v51 = vpop.f32.mrf.mxu0  ;;  %p2081_p6 = scmp.lt.s32.totalorder %s2079_s14, %s2073_s20 }
 0x4bd   : > { %v1633_v53 = vpop.f32.mrf.mxu0  ;;  %p2082_p2 = por %p2081_p6, %p2080_p13 }
 0x4bf   : > { %v1110_v55 = vpop.f32.mrf.mxu0  ;;  %p2083_p11 = pnand %p2082_p2, %p2076_p7 }
 0x4c0   : > { %1117 = vrot.lane.b32.xlu0 %v1110_v55, %s2188_s28 }
 0x4c1   : > { %v1644_v56 = vpop.f32.mrf.mxu0 }
 0x4c3   : > { %v1113_v57 = vpop.f32.mrf.mxu0 }
 0x4c5   : > { %v1645_v58 = vpop.f32.mrf.mxu0 }
 0x4c7   : > { %v1227_v59 = vpop.f32.mrf.mxu0 }
 0x4c8   : > { %1234 = vrot.lane.b32.xlu1 %v1227_v59, %s2189_s22 }
 0x4c9   : > { %v1656_v60 = vpop.f32.mrf.mxu0 }
 0x4cb   : > { %v1230_v61 = vpop.f32.mrf.mxu0 }
 0x4cd   : > { %v1657_v62 = vpop.f32.mrf.mxu0 }
 0x52a   : > { %v1001_v63 = vpop.permute.xlu1 %1000 }
 0x52b   : > { %1004 = vst.msk [vmem:[#allocation2] sm:$0xff] %vm1003_vm4, %v1001_v63 }
 0x532   : > { %v1118_v0 = vpop.permute.xlu0 %1117 }
 0x533   : > { %1121 = vst.msk [vmem:[#allocation2] sm:$0xff] %vm1120_vm5, %v1118_v0 }
 0x53a   : > { %v1235_v1 = vpop.permute.xlu1 %1234 }
 0x53b   : > { %1238 = vst.msk [vmem:[#allocation2] sm:$0xff] %vm1237_vm6, %v1235_v1 }
 0x542   : > { %v1239_v2 = vld [vmem:[#allocation2] sm:$0xff] }
 0x543   : > { %v1240_v3 = vpack.c.bf16 %v1239_v2, %v1239_v2 }
 0x545   : > { %1663 = vmatmul.mubr.msk.bf16.vlgmr.msra.gmra.mxu1 %vm598_vm1, %v1240_v3 }
 0x605   : > { %v1301_v5 = vpop.f32.mrf.mxu1 }
 0x606   : > { %v1302_v6 = vadd.f32 %v1550_v4, %v1301_v5 }
 0x607   : > { %v1664_v7 = vpop.f32.mrf.mxu1 }
 0x608   : > { %1307 = vst.msk [vmem:[%s570_s5] sm:$0xff] %vm598_vm1, %v1302_v6 }
 0x609   : > { %v1304_v8 = vpop.f32.mrf.mxu1 }
 0x60a   : > { %2086 = shalt.err (!%p2083_p11)
}
 0x60b   : > { %s2087_s25 = scalar_lea.hbm %s2570_s12, 128  ;;  %s2091_s28 = scalar_lea.hbm %s2682_s23, 256 }
 0x60c   : > { %p2088_p3 = scmp.ne.s32.totalorder %s2570_s12, %s2087_s25  ;;  %p2092_p4 = scmp.lt.s32.totalorder %s2570_s12, %s2682_s23 }
 0x60d   : > { %p2093_p8 = scmp.lt.s32.totalorder %s2091_s28, %s2087_s25 }
 0x60e   : > { %p2089_p5 = pnand %p2088_p3, %p2683_p12 }
 0x60f   : > { %p2094_p9 = por %p2093_p8, %p2092_p4 }
 0x610   : > { %p2090_p0 = pneg %p2089_p5 }
 0x612   : > { %p2095_p1 = pnand %p2094_p9, %p2090_p0 }
 0x614   : > { %2098 = shalt.err (!%p2095_p1)
}
 0x615   : > { %1696 = dma.vmem_to_hbm [thread:$0]  (%p2683_p12), %s2572_s21, 128, %s2570_s12, %s1309_s29   ;;  %v1665_v9 = vpop.f32.mrf.mxu1 }
 0x616 PF: > { %s2684_s30 = sld [smem:[#allocation25_spill]] }
 0x617   : > { %s2685_s10 = sld [smem:[#allocation30_spill]] }
 0x618   : > { %s2686_s11 = sld [smem:[#allocation27_spill]] }
 0x61c   : > { %s1335_s15 = sand.u32 1, %s2684_s30  }
 0x61d   : > { %p2687_p10 = scmp.ne.s32.totalorder %s2685_s10, 0  ;;  %s1336_s5 = scalar_lea.sflag [#allocation5], %s1335_s15 }
 0x61e   : > { %p2688_p7 = scmp.ge.s32.totalorder %s2686_s11, 2 }
 0x620   : > { %p1728_p13 = pnand %p2688_p7, %p2687_p10 }
 0x622   : > { %p1729_p6 = pneg %p1728_p13 }
 0x624   : > { %2144 = dma.done.wait (%p1729_p6), %s1336_s5, 128  }
 0x625   : > { %2146 = vsyncadd (%p1729_p6), %s1336_s5, 4294967168  ;;  %s33_s22 = sadd.s32 1, %s2686_s11   ;;  %s2689_s16 = sld [smem:[#allocation29_spill]] }
 0x626   : > { %p30_p2 = scmp.ge.s32.totalorder %s33_s22, 4   ;;  %s2690_s20 = sld [smem:[#allocation26_spill]] }
 0x627   : > { %s2691_s21 = sld [smem:[#allocation28_spill]]  ;;  %s2692_s17 = smov %s2153_s18 }
 0x628   : > { %s2693_s18 = smov %s2157_s19  ;;  %32 = sbr.rel (!%p30_p2) target bundleno = 17 (0x11), region = 157 }
 0x62b   : > { %s2694_s19 = smov %s2689_s16 }
 0x62d   :  { %1341 = vsyncpa [#allocation4], 1 }
 0x62e   :  { %1343 = vsyncpa [#allocation4 + $0x1], 1 }
 0x62f   :  { %1344 = vsyncpa [#allocation7], 1 }
 0x630   :  { %1346 = vsyncpa [#allocation7 + $0x1], 1 }
 0x631   :  { %1347 = vsyncpa [#allocation10], 1 }
 0x632   :  { %1348 = vsyncpa [#allocation13], 1 }
 0x633   :  { %1349 = vsyncpa [#allocation16], 1 }
 0x634   :  { %1350 = vsyncpa [#allocation5], 1 }
 0x635   :  { %1352 = vsyncpa [#allocation5 + $0x1], 1 }

</bundles_post_ra>
